<compile_context>
chip_gen: v5e
topology: v5e:2x2
jax: 0.10.0
libtpu: 0.0.40
codegen_flags: <defaults>
</compile_context>

<pallas_src>
import jax
import jax.numpy as jnp
from jax.experimental import pallas as pl
from jax.experimental.pallas import tpu as pltpu


H_LSTM = 10          # self.context_LSTMcell_size
HC = 20              # self.controller_hidden_size
GP = 32              # per-gate lane pitch (gate k -> lanes [32k, 32k+10))
LANES = 4 * GP       # 128: whole gate vector == one vreg lane group
OUT_OFF, H_OFF, C_OFF = 0, 32, 64   # packed per-step output lane layout


def _round_up(n, m):
    return ((n + m - 1) // m) * m


def _slab_layout(obs_size):
    """Row offsets of each parameter block inside the packed (rows,128) slab."""
    O, H = obs_size, H_LSTM
    row_wx = 0                              # Wx   (O, 128)   obs -> gates
    row_wh = _round_up(O, 8)                # Wh   (H, 128)   h   -> gates
    row_bl = row_wh + _round_up(H, 8)       # bias (1, 128)   b_ih + b_hh
    row_w1 = row_bl + 8                     # W1^T (H, HC)
    row_b1 = row_w1 + _round_up(H, 8)       # b1   (1, HC)
    row_w2 = row_b1 + 8                     # W2^T (HC, A)
    row_b2 = row_w2 + _round_up(HC, 8)      # b2   (1, A)
    row_sc = row_b2 + 8                     # per-lane output scale
    row_of = row_sc + 8                     # per-lane output offset
    rows = _round_up(row_of + 1, 8)
    return dict(row_wx=row_wx, row_wh=row_wh, row_bl=row_bl, row_w1=row_w1,
                row_b1=row_b1, row_w2=row_w2, row_b2=row_b2,
                row_sc=row_sc, row_of=row_of, rows=rows)


def init_params(key, obs_size, action_size):
    """Deterministic parameter init mimicking PyTorch shapes/uniform ranges."""
    H = H_LSTM
    ks = jax.random.split(key, 8)

    def u(k, shape, fan_in):
        bound = 1.0 / jnp.sqrt(jnp.float32(fan_in))
        return jax.random.uniform(k, shape, jnp.float32, -bound, bound)

    return {
        # nn.LSTMCell(obs_size, 10); gate order i, f, g, o
        "w_ih": u(ks[0], (4 * H, obs_size), H),
        "w_hh": u(ks[1], (4 * H, H), H),
        "b_ih": u(ks[2], (4 * H,), H),
        "b_hh": u(ks[3], (4 * H,), H),
        # nn.Linear(10, 20)
        "w1": u(ks[4], (HC, H), H),
        "b1": u(ks[5], (HC,), H),
        # nn.Linear(20, action_size)
        "w2": u(ks[6], (action_size, HC), HC),
        "b2": u(ks[7], (action_size,), HC),
    }


def pack_params(params, obs_size, action_size):
    """Pack all weights/biases into one (rows, 128) f32 slab (built once)."""
    O, H, A = obs_size, H_LSTM, action_size
    assert A <= GP, "packed-output layout assumes action_size <= 32"
    L = _slab_layout(O)

    # sigmoid(z) = 0.5*tanh(z/2) + 0.5  -> pre-scale i/f/o gate columns by 0.5
    gate_scale = jnp.concatenate([jnp.full((H,), 0.5), jnp.full((H,), 0.5),
                                  jnp.ones((H,)), jnp.full((H,), 0.5)]
                                 ).astype(jnp.float32)
    w_x = params["w_ih"].T.astype(jnp.float32) * gate_scale[None, :]   # (O, 4H)
    w_h = params["w_hh"].T.astype(jnp.float32) * gate_scale[None, :]   # (H, 4H)
    b_l = (params["b_ih"] + params["b_hh"]).astype(jnp.float32) * gate_scale

    slab = jnp.zeros((L["rows"], LANES), jnp.float32)
    for g in range(4):                       # gate g -> lanes [32g, 32g+H)
        lo = g * GP
        slab = slab.at[L["row_wx"]:L["row_wx"] + O, lo:lo + H].set(
            w_x[:, g * H:(g + 1) * H])
        slab = slab.at[L["row_wh"]:L["row_wh"] + H, lo:lo + H].set(
            w_h[:, g * H:(g + 1) * H])
        slab = slab.at[L["row_bl"], lo:lo + H].set(b_l[g * H:(g + 1) * H])

    slab = slab.at[L["row_w1"]:L["row_w1"] + H, 0:HC].set(
        params["w1"].T.astype(jnp.float32))
    slab = slab.at[L["row_b1"], 0:HC].set(params["b1"].astype(jnp.float32))
    slab = slab.at[L["row_w2"]:L["row_w2"] + HC, 0:A].set(
        params["w2"].T.astype(jnp.float32))
    slab = slab.at[L["row_b2"], 0:A].set(params["b2"].astype(jnp.float32))

    # output_t[0][1] = (output_t[0][1] + 1) / 2  as per-lane affine out*s + t
    sc = jnp.ones((A,), jnp.float32)
    of = jnp.zeros((A,), jnp.float32)
    if A > 1:                                # A == 1: fix-up is a no-op
        sc = sc.at[1].set(0.5)
        of = of.at[1].set(0.5)
    slab = slab.at[L["row_sc"], 0:A].set(sc)
    slab = slab.at[L["row_of"], 0:A].set(of)
    return slab


def make_context_only_net(obs_size, action_size):
    """Returns (forward, rollout).

    forward(obs(O,), w_slab, h(1,H), c(1,H)) -> (out(A,), h_next, c_next)
    rollout(obs_seq(T,O), w_slab, h, c)      -> (outs(T,A), h_T, c_T)
    """
    O, H, A = obs_size, H_LSTM, action_size
    assert A <= GP and H <= GP
    L = _slab_layout(O)

    def kernel(obs_ref, state_ref, w_ref, out_ref, h_scr, c_scr):
        t = pl.program_id(0)

        @pl.when(t == 0)
        def _():                              # load initial state once
            h_scr[...] = state_ref[:, H_OFF:H_OFF + H]
            c_scr[...] = state_ref[:, C_OFF:C_OFF + H]

        obs = obs_ref[...]                    # (1, O)
        h = h_scr[...]                        # (1, H)
        c = c_scr[...]                        # (1, H)

        # ---- LSTMCell: gates = x@Wx + h@Wh + b, all 4 gates in one 128-lane vreg
        wx = w_ref[L["row_wx"]:L["row_wx"] + O, :]          # (O, 128)
        wh = w_ref[L["row_wh"]:L["row_wh"] + H, :]          # (H, 128)
        bl = w_ref[L["row_bl"]:L["row_bl"] + 1, :]          # (1, 128)
        gates = (jnp.dot(obs, wx, preferred_element_type=jnp.float32)
                 + jnp.dot(h, wh, preferred_element_type=jnp.float32) + bl)

        tg = jnp.tanh(gates)                                # one EUP pass, 1 vreg
        i_g = 0.5 * tg[:, 0 * GP:0 * GP + H] + 0.5          # sigmoid(i)
        f_g = 0.5 * tg[:, 1 * GP:1 * GP + H] + 0.5          # sigmoid(f)
        g_g = tg[:, 2 * GP:2 * GP + H]                      # tanh(g)
        o_g = 0.5 * tg[:, 3 * GP:3 * GP + H] + 0.5          # sigmoid(o)

        c_new = f_g * c + i_g * g_g
        h_new = o_g * jnp.tanh(c_new)

        # ---- Controller_hidden_linear + tanh
        w1 = w_ref[L["row_w1"]:L["row_w1"] + H, 0:HC]
        b1 = w_ref[L["row_b1"]:L["row_b1"] + 1, 0:HC]
        hid = jnp.tanh(
            jnp.dot(h_new, w1, preferred_element_type=jnp.float32) + b1)

        # ---- Controller_output_linear + tanh
        w2 = w_ref[L["row_w2"]:L["row_w2"] + HC, 0:A]
        b2 = w_ref[L["row_b2"]:L["row_b2"] + 1, 0:A]
        out = jnp.tanh(
            jnp.dot(hid, w2, preferred_element_type=jnp.float32) + b2)

        # out[1] = (out[1]+1)/2  as precomputed per-lane affine (no iota/select)
        sc = w_ref[L["row_sc"]:L["row_sc"] + 1, 0:A]
        of = w_ref[L["row_of"]:L["row_of"] + 1, 0:A]
        out = out * sc + of

        # carry state to next grid step
        h_scr[...] = h_new
        c_scr[...] = c_new

        # one lane-dense packed output block per step: out | h | c
        out_ref[...] = jnp.zeros((1, LANES), jnp.float32)
        out_ref[:, OUT_OFF:OUT_OFF + A] = out
        out_ref[:, H_OFF:H_OFF + H] = h_new
        out_ref[:, C_OFF:C_OFF + H] = c_new

    def build_call(T):
        return pl.pallas_call(
            kernel,
            out_shape=jax.ShapeDtypeStruct((T, 1, LANES), jnp.float32),
            grid_spec=pltpu.PrefetchScalarGridSpec(
                num_scalar_prefetch=0,
                grid=(T,),
                in_specs=[
                    # obs[t] streamed per step (leading dim squeezed)
                    pl.BlockSpec((None, 1, O), lambda t: (t, 0, 0)),
                    # packed initial state: constant index -> DMA'd once
                    pl.BlockSpec((1, LANES), lambda t: (0, 0)),
                    # weight slab: constant index -> DMA'd once
                    pl.BlockSpec((L["rows"], LANES), lambda t: (0, 0)),
                ],
                out_specs=pl.BlockSpec((None, 1, LANES), lambda t: (t, 0, 0)),
                scratch_shapes=[pltpu.VMEM((1, H), jnp.float32),   # h carry
                                pltpu.VMEM((1, H), jnp.float32)],  # c carry
            ),
            compiler_params=pltpu.CompilerParams(
                dimension_semantics=("arbitrary",)),   # sequential recurrence
        )

    @jax.jit
    def rollout(obs_seq, w_slab, h_prev, c_prev):
        T = obs_seq.shape[0]
        obs3 = obs_seq.reshape(T, 1, O).astype(jnp.float32)
        state0 = (jnp.zeros((1, LANES), jnp.float32)
                  .at[:, H_OFF:H_OFF + H].set(h_prev.reshape(1, H).astype(jnp.float32))
                  .at[:, C_OFF:C_OFF + H].set(c_prev.reshape(1, H).astype(jnp.float32)))
        packed = build_call(T)(obs3, state0, w_slab)        # (T, 1, 128)
        outs = packed[:, 0, OUT_OFF:OUT_OFF + A]            # (T, A)
        h_next = packed[T - 1, :, H_OFF:H_OFF + H]          # (1, H)
        c_next = packed[T - 1, :, C_OFF:C_OFF + H]          # (1, H)
        return outs, h_next, c_next

    def forward(obs, w_slab, h_prev, c_prev):
        outs, h_next, c_next = rollout(obs.reshape(1, O), w_slab, h_prev, c_prev)
        return outs[0], h_next, c_next

    return forward, rollout


def reference_step(obs, params, h_prev, c_prev):
    """Pure-JAX single-step reference matching the PyTorch module exactly."""
    H = H_LSTM
    x = obs.reshape(1, -1)
    gates = (x @ params["w_ih"].T + h_prev @ params["w_hh"].T
             + params["b_ih"] + params["b_hh"])
    i = jax.nn.sigmoid(gates[:, 0 * H:1 * H])
    f = jax.nn.sigmoid(gates[:, 1 * H:2 * H])
    g = jnp.tanh(gates[:, 2 * H:3 * H])
    o = jax.nn.sigmoid(gates[:, 3 * H:4 * H])
    c = f * c_prev + i * g
    h = o * jnp.tanh(c)
    hid = jnp.tanh(h @ params["w1"].T + params["b1"])
    out = jnp.tanh(hid @ params["w2"].T + params["b2"])
    out = out.at[0, 1].set((out[0, 1] + 1.0) * 0.5)
    return out[0], h, c


if __name__ == "__main__":
    obs_size, action_size, T = 8, 4, 8

    key = jax.random.PRNGKey(0)
    pkey, okey, hkey, ckey, o1key = jax.random.split(key, 5)
    params = init_params(pkey, obs_size, action_size)
    w_slab = pack_params(params, obs_size, action_size)
    forward, rollout = make_context_only_net(obs_size, action_size)

    # ---- multi-step rollout from the module's zero initial state ----
    obs_seq = jax.random.normal(okey, (T, obs_size), jnp.float32)
    h0 = jnp.zeros((1, H_LSTM), jnp.float32)
    c0 = jnp.zeros((1, H_LSTM), jnp.float32)
    outs, h_T, c_T = rollout(obs_seq, w_slab, h0, c0)
    jax.block_until_ready((outs, h_T, c_T))

    h_r, c_r = h0, c0
    outs_r = []
    for t in range(T):
        o_r, h_r, c_r = reference_step(obs_seq[t], params, h_r, c_r)
        outs_r.append(o_r)
    outs_r = jnp.stack(outs_r)
    assert outs.shape == (T, action_size)
    assert h_T.shape == (1, H_LSTM) and c_T.shape == (1, H_LSTM)
    assert bool(jnp.allclose(outs, outs_r, atol=1e-4, rtol=1e-4))
    assert bool(jnp.allclose(h_T, h_r, atol=1e-4, rtol=1e-4))
    assert bool(jnp.allclose(c_T, c_r, atol=1e-4, rtol=1e-4))

    # ---- single step with nonzero random state (exercises w_hh and f*c) ----
    h_rand = 0.5 * jax.random.normal(hkey, (1, H_LSTM), jnp.float32)
    c_rand = 0.5 * jax.random.normal(ckey, (1, H_LSTM), jnp.float32)
    obs1 = jax.random.normal(o1key, (obs_size,), jnp.float32)
    out1, h1, c1 = forward(obs1, w_slab, h_rand, c_rand)
    jax.block_until_ready((out1, h1, c1))
    out1_r, h1_r, c1_r = reference_step(obs1, params, h_rand, c_rand)
    assert out1.shape == (action_size,)
    assert bool(jnp.allclose(out1, out1_r, atol=5e-5, rtol=1e-4))
    assert bool(jnp.allclose(h1, h1_r, atol=5e-5, rtol=1e-4))
    assert bool(jnp.allclose(c1, c1_r, atol=5e-5, rtol=1e-4))

    print("KERNEL_OK")
</pallas_src>

<mosaic_0001>
module attributes {stable_mosaic.version = 11 : i64} {
  func.func @kernel(%arg0: i32, %arg1: memref<1x1x8xf32, #tpu.memory_space<vmem>>, %arg2: memref<1x128xf32, #tpu.memory_space<vmem>>, %arg3: memref<104x128xf32, #tpu.memory_space<vmem>>, %arg4: memref<1x1x128xf32, #tpu.memory_space<vmem>>, %arg5: memref<1x10xf32, #tpu.memory_space<vmem>>, %arg6: memref<1x10xf32, #tpu.memory_space<vmem>>) attributes {dimension_semantics = [#tpu.dimension_semantics<arbitrary>], iteration_bounds = array<i64: 8>, scalar_prefetch = 0 : i64, scratch_operands = 2 : i64, tpu.core_type = #tpu.core_type<tc>, window_params = [{transform_indices = @transform_0, window_bounds = array<i64: 1, 1, 8>}, {pipeline_mode = #tpu.pipeline_mode<synchronous>, transform_indices = @transform_1, window_bounds = array<i64: 1, 128>}, {pipeline_mode = #tpu.pipeline_mode<synchronous>, transform_indices = @transform_2, window_bounds = array<i64: 104, 128>}, {transform_indices = @transform_3, window_bounds = array<i64: 1, 1, 128>}]} {
    %c0_i32 = arith.constant 0 : i32
    %0 = arith.cmpi eq, %arg0, %c0_i32 : i32
    %1 = arith.extui %0 : i1 to i32
    %c0_i32_0 = arith.constant 0 : i32
    %2 = arith.cmpi ne, %1, %c0_i32_0 : i32
    scf.if %2 {
      %c0_42 = arith.constant 0 : index
      %c32_43 = arith.constant 32 : index
      %65 = vector.load %arg2[%c0_42, %c32_43] : memref<1x128xf32, #tpu.memory_space<vmem>>, vector<1x10xf32>
      %c0_44 = arith.constant 0 : index
      %c0_45 = arith.constant 0 : index
      %66 = vector.load %arg5[%c0_44, %c0_45] : memref<1x10xf32, #tpu.memory_space<vmem>>, vector<1x10xf32>
      tpu.vector_store %arg5[%c0_44, %c0_45], %65 {strides = array<i32>} : memref<1x10xf32, #tpu.memory_space<vmem>>, vector<1x10xf32>,
      %c0_46 = arith.constant 0 : index
      %c64_47 = arith.constant 64 : index
      %67 = vector.load %arg2[%c0_46, %c64_47] : memref<1x128xf32, #tpu.memory_space<vmem>>, vector<1x10xf32>
      %c0_48 = arith.constant 0 : index
      %c0_49 = arith.constant 0 : index
      %68 = vector.load %arg6[%c0_48, %c0_49] : memref<1x10xf32, #tpu.memory_space<vmem>>, vector<1x10xf32>
      tpu.vector_store %arg6[%c0_48, %c0_49], %67 {strides = array<i32>} : memref<1x10xf32, #tpu.memory_space<vmem>>, vector<1x10xf32>,
    } else {
    }
    %c0 = arith.constant 0 : index
    %c0_1 = arith.constant 0 : index
    %c0_2 = arith.constant 0 : index
    %3 = vector.load %arg1[%c0, %c0_1, %c0_2] : memref<1x1x8xf32, #tpu.memory_space<vmem>>, vector<1x1x8xf32>
    %4 = vector.shape_cast %3 : vector<1x1x8xf32> to vector<1x8xf32>
    %c0_3 = arith.constant 0 : index
    %c0_4 = arith.constant 0 : index
    %5 = vector.load %arg5[%c0_3, %c0_4] : memref<1x10xf32, #tpu.memory_space<vmem>>, vector<1x10xf32>
    %c0_5 = arith.constant 0 : index
    %c0_6 = arith.constant 0 : index
    %6 = vector.load %arg6[%c0_5, %c0_6] : memref<1x10xf32, #tpu.memory_space<vmem>>, vector<1x10xf32>
    %c0_7 = arith.constant 0 : index
    %c0_8 = arith.constant 0 : index
    %7 = vector.load %arg3[%c0_7, %c0_8] : memref<104x128xf32, #tpu.memory_space<vmem>>, vector<8x128xf32>
    %c8 = arith.constant 8 : index
    %c0_9 = arith.constant 0 : index
    %8 = vector.load %arg3[%c8, %c0_9] : memref<104x128xf32, #tpu.memory_space<vmem>>, vector<10x128xf32>
    %c24 = arith.constant 24 : index
    %c0_10 = arith.constant 0 : index
    %9 = vector.load %arg3[%c24, %c0_10] : memref<104x128xf32, #tpu.memory_space<vmem>>, vector<1x128xf32>
    %cst = arith.constant dense<0.000000e+00> : vector<1x128xf32>
    %10 = tpu.matmul %4, %7, %cst {dimension_numbers = #tpu.dot_dimension_numbers<[1], [0], [0], [1], [0, 0, 1, 1], [], []>} : vector<1x8xf32>, vector<8x128xf32>, vector<1x128xf32> -> vector<1x128xf32>
    %cst_11 = arith.constant dense<0.000000e+00> : vector<1x128xf32>
    %11 = tpu.matmul %5, %8, %cst_11 {dimension_numbers = #tpu.dot_dimension_numbers<[1], [0], [0], [1], [0, 0, 1, 1], [], []>} : vector<1x10xf32>, vector<10x128xf32>, vector<1x128xf32> -> vector<1x128xf32>
    %12 = arith.addf %10, %11 : vector<1x128xf32>
    %13 = arith.addf %12, %9 : vector<1x128xf32>
    %14 = math.tanh %13 : vector<1x128xf32>
    %15 = vector.extract_strided_slice %14 {offsets = [0, 0], sizes = [1, 10], strides = [1, 1]} : vector<1x128xf32> to vector<1x10xf32>
    %cst_12 = arith.constant 5.000000e-01 : f32
    %16 = vector.broadcast %cst_12 : f32 to vector<1x10xf32>
    %17 = arith.mulf %16, %15 : vector<1x10xf32>
    %cst_13 = arith.constant 5.000000e-01 : f32
    %18 = vector.broadcast %cst_13 : f32 to vector<1x10xf32>
    %19 = arith.addf %17, %18 : vector<1x10xf32>
    %20 = vector.extract_strided_slice %14 {offsets = [0, 32], sizes = [1, 10], strides = [1, 1]} : vector<1x128xf32> to vector<1x10xf32>
    %cst_14 = arith.constant 5.000000e-01 : f32
    %21 = vector.broadcast %cst_14 : f32 to vector<1x10xf32>
    %22 = arith.mulf %21, %20 : vector<1x10xf32>
    %cst_15 = arith.constant 5.000000e-01 : f32
    %23 = vector.broadcast %cst_15 : f32 to vector<1x10xf32>
    %24 = arith.addf %22, %23 : vector<1x10xf32>
    %25 = vector.extract_strided_slice %14 {offsets = [0, 64], sizes = [1, 10], strides = [1, 1]} : vector<1x128xf32> to vector<1x10xf32>
    %26 = vector.extract_strided_slice %14 {offsets = [0, 96], sizes = [1, 10], strides = [1, 1]} : vector<1x128xf32> to vector<1x10xf32>
    %cst_16 = arith.constant 5.000000e-01 : f32
    %27 = vector.broadcast %cst_16 : f32 to vector<1x10xf32>
    %28 = arith.mulf %27, %26 : vector<1x10xf32>
    %cst_17 = arith.constant 5.000000e-01 : f32
    %29 = vector.broadcast %cst_17 : f32 to vector<1x10xf32>
    %30 = arith.addf %28, %29 : vector<1x10xf32>
    %31 = arith.mulf %24, %6 : vector<1x10xf32>
    %32 = arith.mulf %19, %25 : vector<1x10xf32>
    %33 = arith.addf %31, %32 : vector<1x10xf32>
    %34 = math.tanh %33 : vector<1x10xf32>
    %35 = arith.mulf %30, %34 : vector<1x10xf32>
    %c32 = arith.constant 32 : index
    %c0_18 = arith.constant 0 : index
    %36 = vector.load %arg3[%c32, %c0_18] : memref<104x128xf32, #tpu.memory_space<vmem>>, vector<10x20xf32>
    %c48 = arith.constant 48 : index
    %c0_19 = arith.constant 0 : index
    %37 = vector.load %arg3[%c48, %c0_19] : memref<104x128xf32, #tpu.memory_space<vmem>>, vector<1x20xf32>
    %cst_20 = arith.constant dense<0.000000e+00> : vector<1x20xf32>
    %38 = tpu.matmul %35, %36, %cst_20 {dimension_numbers = #tpu.dot_dimension_numbers<[1], [0], [0], [1], [0, 0, 1, 1], [], []>} : vector<1x10xf32>, vector<10x20xf32>, vector<1x20xf32> -> vector<1x20xf32>
    %39 = arith.addf %38, %37 : vector<1x20xf32>
    %40 = math.tanh %39 : vector<1x20xf32>
    %c56 = arith.constant 56 : index
    %c0_21 = arith.constant 0 : index
    %41 = vector.load %arg3[%c56, %c0_21] : memref<104x128xf32, #tpu.memory_space<vmem>>, vector<20x4xf32>
    %c80 = arith.constant 80 : index
    %c0_22 = arith.constant 0 : index
    %42 = vector.load %arg3[%c80, %c0_22] : memref<104x128xf32, #tpu.memory_space<vmem>>, vector<1x4xf32>
    %cst_23 = arith.constant dense<0.000000e+00> : vector<1x4xf32>
    %43 = tpu.matmul %40, %41, %cst_23 {dimension_numbers = #tpu.dot_dimension_numbers<[1], [0], [0], [1], [0, 0, 1, 1], [], []>} : vector<1x20xf32>, vector<20x4xf32>, vector<1x4xf32> -> vector<1x4xf32>
    %44 = arith.addf %43, %42 : vector<1x4xf32>
    %45 = math.tanh %44 : vector<1x4xf32>
    %c88 = arith.constant 88 : index
    %c0_24 = arith.constant 0 : index
    %46 = vector.load %arg3[%c88, %c0_24] : memref<104x128xf32, #tpu.memory_space<vmem>>, vector<1x4xf32>
    %c96 = arith.constant 96 : index
    %c0_25 = arith.constant 0 : index
    %47 = vector.load %arg3[%c96, %c0_25] : memref<104x128xf32, #tpu.memory_space<vmem>>, vector<1x4xf32>
    %48 = arith.mulf %45, %46 : vector<1x4xf32>
    %49 = arith.addf %48, %47 : vector<1x4xf32>
    %c0_26 = arith.constant 0 : index
    %c0_27 = arith.constant 0 : index
    %50 = vector.load %arg5[%c0_26, %c0_27] : memref<1x10xf32, #tpu.memory_space<vmem>>, vector<1x10xf32>
    tpu.vector_store %arg5[%c0_26, %c0_27], %35 {strides = array<i32>} : memref<1x10xf32, #tpu.memory_space<vmem>>, vector<1x10xf32>,
    %c0_28 = arith.constant 0 : index
    %c0_29 = arith.constant 0 : index
    %51 = vector.load %arg6[%c0_28, %c0_29] : memref<1x10xf32, #tpu.memory_space<vmem>>, vector<1x10xf32>
    tpu.vector_store %arg6[%c0_28, %c0_29], %33 {strides = array<i32>} : memref<1x10xf32, #tpu.memory_space<vmem>>, vector<1x10xf32>,
    %cst_30 = arith.constant 0.000000e+00 : f32
    %52 = vector.broadcast %cst_30 : f32 to vector<1x128xf32>
    %c0_31 = arith.constant 0 : index
    %c0_32 = arith.constant 0 : index
    %c0_33 = arith.constant 0 : index
    %53 = vector.load %arg4[%c0_31, %c0_32, %c0_33] : memref<1x1x128xf32, #tpu.memory_space<vmem>>, vector<1x1x128xf32>
    %54 = vector.shape_cast %53 : vector<1x1x128xf32> to vector<1x128xf32>
    %55 = vector.shape_cast %52 : vector<1x128xf32> to vector<1x1x128xf32>
    tpu.vector_store %arg4[%c0_31, %c0_32, %c0_33], %55 {strides = array<i32>} : memref<1x1x128xf32, #tpu.memory_space<vmem>>, vector<1x1x128xf32>,
    %c0_34 = arith.constant 0 : index
    %c0_35 = arith.constant 0 : index
    %c0_36 = arith.constant 0 : index
    %56 = vector.load %arg4[%c0_34, %c0_35, %c0_36] : memref<1x1x128xf32, #tpu.memory_space<vmem>>, vector<1x1x4xf32>
    %57 = vector.shape_cast %56 : vector<1x1x4xf32> to vector<1x4xf32>
    %58 = vector.shape_cast %49 : vector<1x4xf32> to vector<1x1x4xf32>
    tpu.vector_store %arg4[%c0_34, %c0_35, %c0_36], %58 {strides = array<i32>} : memref<1x1x128xf32, #tpu.memory_space<vmem>>, vector<1x1x4xf32>,
    %c0_37 = arith.constant 0 : index
    %c0_38 = arith.constant 0 : index
    %c32_39 = arith.constant 32 : index
    %59 = vector.load %arg4[%c0_37, %c0_38, %c32_39] : memref<1x1x128xf32, #tpu.memory_space<vmem>>, vector<1x1x10xf32>
    %60 = vector.shape_cast %59 : vector<1x1x10xf32> to vector<1x10xf32>
    %61 = vector.shape_cast %35 : vector<1x10xf32> to vector<1x1x10xf32>
    tpu.vector_store %arg4[%c0_37, %c0_38, %c32_39], %61 {strides = array<i32>} : memref<1x1x128xf32, #tpu.memory_space<vmem>>, vector<1x1x10xf32>,
    %c0_40 = arith.constant 0 : index
    %c0_41 = arith.constant 0 : index
    %c64 = arith.constant 64 : index
    %62 = vector.load %arg4[%c0_40, %c0_41, %c64] : memref<1x1x128xf32, #tpu.memory_space<vmem>>, vector<1x1x10xf32>
    %63 = vector.shape_cast %62 : vector<1x1x10xf32> to vector<1x10xf32>
    %64 = vector.shape_cast %33 : vector<1x10xf32> to vector<1x1x10xf32>
    tpu.vector_store %arg4[%c0_40, %c0_41, %c64], %64 {strides = array<i32>} : memref<1x1x128xf32, #tpu.memory_space<vmem>>, vector<1x1x10xf32>,
    return
  }
  func.func @transform_0(%arg0: i32) -> (i32, i32, i32) {
    %c0_i32 = arith.constant 0 : i32
    %c0_i32_0 = arith.constant 0 : i32
    %c0_i32_1 = arith.constant 0 : i32
    return %arg0, %c0_i32, %c0_i32_0 : i32, i32, i32
  }
  func.func @transform_1(%arg0: i32) -> (i32, i32) {
    %c0_i32 = arith.constant 0 : i32
    %c0_i32_0 = arith.constant 0 : i32
    %c0_i32_1 = arith.constant 0 : i32
    return %c0_i32, %c0_i32_0 : i32, i32
  }
  func.func @transform_2(%arg0: i32) -> (i32, i32) {
    %c0_i32 = arith.constant 0 : i32
    %c0_i32_0 = arith.constant 0 : i32
    %c0_i32_1 = arith.constant 0 : i32
    return %c0_i32, %c0_i32_0 : i32, i32
  }
  func.func @transform_3(%arg0: i32) -> (i32, i32, i32) {
    %c0_i32 = arith.constant 0 : i32
    %c0_i32_0 = arith.constant 0 : i32
    %c0_i32_1 = arith.constant 0 : i32
    return %arg0, %c0_i32, %c0_i32_0 : i32, i32, i32
  }
}

</mosaic_0001>

<bundles_post_ra>
// kernel: rollout.1
= control target key start
LH: loop header
LB: loop body
LE: loop exit
PB: predicated region body
PF: predicated region fallthrough
CT: control target
= control target key end

     0   :  { %8 = vsyncpa [#allocation5], 0  ;;  %s554_s12 = smov 0   ;;  %s594_s0 = inlined_call_operand.vmem [shape: f32[8,1,8], index: 0, kind: input, shape index: {}]   ;;  %s595_s1 = inlined_call_operand.vmem [shape: f32[1,128], index: 1, kind: input, shape index: {}]   ;;  %s596_s2 = inlined_call_operand.hbm [shape: f32[104,128], index: 2, kind: input, shape index: {}]   ;;  %s597_s3 = inlined_call_operand.vmem [shape: f32[8,1,128], index: 3, kind: output, shape index: {}]  }
   0x1 LB: > { %s127_s15 = sshll.u32 %s596_s2, 4  ;;  %s428_s16 = sadd.s32 4294967295, %s523_s12   ;;  %s523_s12 = sphi %s554_s12, %s14_s12   ;;  %s128_s15 = int_to_ptr.hbm [resolvable:$true] %s127_s15 }
   0x2   : > { %p430_p0 = scmp.ge.s32.totalorder %s523_s12, 1  ;;  %p113_p1 = scmp.lt.s32.totalorder %s523_s12, 9 }
   0x3   : > { %p431_p2 = scmp.ne.s32.totalorder %s428_s16, 0  ;;  %p453_p3 = scmp.eq.s32.totalorder %s428_s16, 0 }
   0x4   : > { %p114_p4 = pnand %p430_p0, %p113_p1  ;;  %s525_s17 = smov [#allocation4]  }
   0x5   : > { %s129_s18 = sshll.u32 %s525_s17, 4  ;;  %s526_s19 = smov 128   ;;  %s130_s18 = int_to_ptr.vmem [resolvable:$true] %s129_s18 }
   0x6   : > { %p449_p5 = pneg %p114_p4  ;;  %s527_s20 = smov 8  }
   0x7   : > { %151 = sbr.rel (%p114_p4) target bundleno = 1022 (0x3fe), region = 32 }
   0x8   : > { %p450_p6 = pnand %p453_p3, %p449_p5 }
   0xa   : > { %452 = dma.hbm_to_vmem [thread:$0]  (!%p450_p6), %s128_s15, 1664, %s130_s18, [#allocation5], %s526_s19, %s526_s19, %s527_s20  }
   0xc   : > { %518 = dma.done.wait (%p453_p3), [#allocation5], 1664  }
   0xd   : > { %520 = vsyncadd (%p453_p3), [#allocation5], 4294965632  ;;  %p172_p7 = scmp.lt.s32.totalorder %s428_s16, 7  ;;  %181 = sbr.rel (%p431_p2) target bundleno = 143 (0x8f), region = 40 }
   0xe   : > { %s528_s30 = smov (!%p431_p2), 96   ;;  %s529_s6 = smov (!%p431_p2), 64  }
   0xf   : > { %s173_s21 = scalar_select %p172_p7, %s428_s16, 7 }
  0x11   : > { %s174_s24 = scalar_lea.vmem %s594_s0, %s173_s21  ;;  %s571_s27 = scalar_lea.vmem %s597_s3, %s173_s21 }
  0x12   : > { %v472_v0 = vld [vmem:[%s595_s1] ss:$0 sm:$0xff]  ;;  %vm188_vm0 = vcmask 73728  }
  0x13   : > { %185 = vrot.lane.b32.xlu0 %v472_v0, %s528_s30  ;;  %v473_v1 = vld [vmem:[%s595_s1] ss:$0 sm:$0xff] }
  0x1b   : > { %193 = vrot.lane.b32.xlu0 %v473_v1, %s529_s6 }
  0x85   : > { %v186_v2 = vpop.permute.xlu0 %185 }
  0x86   : > { %189 = vst.msk [vmem:[#allocation2] sm:$0x1] %vm188_vm0, %v186_v2 }
  0x8d   : > { %v194_v3 = vpop.permute.xlu0 %193 }
  0x8e   : > { %196 = vst.msk [vmem:[#allocation3] sm:$0x1] %vm188_vm0, %v194_v3 }
  0x8f PF: > { %v202_v4 = vld [vmem:[#allocation4 + $0x10] sm:$0x3]  ;;  %vm208_vm1 = vcmask 1041408   ;;  %v201_v5 = vld [vmem:[#allocation4 + $0x8] sm:$0xff]  ;;  %v200_v6 = vld [vmem:[#allocation4] sm:$0xff]  ;;  %vm204_vm2 = vcmask 80896  }
  0x90   : > { %436 = vmatpush.msk.msra.mxu0 %vm208_vm1, %v202_v4  ;;  %251 = vmatpush.msra.mxu1 %v200_v6  ;;  %v198_v7 = vld [vmem:[#allocation2] sm:$0x1]  ;;  %vm232_vm3 = vcmask 64512   ;;  %v203_v11 = vld [vmem:[#allocation4 + $0x18] sm:$0x1]  ;;  %s530_s7 = smov 64  }
  0x91   : > { %v197_v8 = vld [vmem:[%s174_s24] sm:$0x1]  ;;  %s531_s8 = smov 32   ;;  %s532_s9 = smov 96   ;;  %v283_v25 = vld [vmem:[#allocation4 + $0x28] sm:$0x3] }
  0x92   : > { %438 = vmatmul.msk.f32.vlgmr.msra.gmra.mxu1 %vm232_vm3, %v197_v8  ;;  %227 = vmatpush.msra.mxu0 %v201_v5  ;;  %v282_v26 = vld [vmem:[#allocation4 + $0x20] sm:$0xff]  ;;  %vm352_vm4 = vcmask 73728   ;;  %v316_v31 = vld [vmem:[#allocation4 + $0x48] sm:$0xf]  ;;  %vm322_vm5 = vcmask 1043456   ;;  %v314_v33 = vld [vmem:[#allocation4 + $0x38] sm:$0xff] }
  0x93   : > { %437 = vmatmul.msk.f32.vlgmr.msra.gmra.mxu0 %vm204_vm2, %v198_v7  ;;  %439 = vmatpush.msk.msra.mxu2 %vm208_vm1, %v283_v25  ;;  %v315_v32 = vld [vmem:[#allocation4 + $0x40] sm:$0xff]  ;;  %v284_v34 = vld [vmem:[#allocation4 + $0x30] sm:$0x1]  ;;  %vm318_vm6 = vcmask 162816   ;;  %v533_v38 = vmov 0.0   ;;  %vm360_vm7 = vcmask 24576  }
  0x94   : > { %441 = vmatpush.msk.msra.mxu3 %vm322_vm5, %v316_v31  ;;  %359 = vst [vmem:[%s571_s27] sm:$0x1] %v533_v38  ;;  %v317_v39 = vld [vmem:[#allocation4 + $0x50] sm:$0x1]  ;;  %v347_v42 = vld [vmem:[#allocation4 + $0x58] sm:$0x1]  ;;  %vm365_vm8 = vcmask 336128  }
  0x95   : > { %v474_v15 = vld [vmem:[#allocation3] ss:$0 sm:$0xff]  ;;  %308 = vmatpush.msra.mxu2 %v282_v26  ;;  %v348_v44 = vld [vmem:[#allocation4 + $0x60] sm:$0x1]  ;;  %vm370_vm9 = vcmask 598528  }
  0x96   : > { %340 = vmatpush.msra.mxu3 %v315_v32 }
  0x98   : > { %341 = vmatpush.msra.mxu3 %v314_v33 }
 0x10f   : > { %v253_v9 = vpop.f32.mrf.mxu1 }
 0x110   : > { %v229_v10 = vpop.f32.mrf.mxu0 }
 0x111   : > { %v254_v12 = vadd.f32 %v253_v9, %v229_v10 }
 0x113   : > { %v256_v13 = vadd.f32 %v254_v12, %v203_v11 }
 0x115   : > { %475 = vtanh.f32 %v256_v13 }
 0x11b   : > { %v476_v14 = vpop.eup %475 }
 0x11c   : > { %267 = vrot.lane.b32.xlu0 %v476_v14, %s530_s7  ;;  %v258_v16 = vmul.f32 0.5, %v476_v14 }
 0x11e   : > { %v259_v17 = vadd.f32 0.5, %v258_v16 }
 0x124   : > { %262 = vrot.lane.b32.xlu0 %v474_v15, %s531_s8 }
 0x18e   : > { %v268_v18 = vpop.permute.xlu0 %267 }
 0x18f   : > { %v270_v19 = vmul.f32 %v268_v18, %v259_v17 }
 0x191   : > { %272 = vrot.lane.b32.xlu1 %v270_v19, %s531_s8 }
 0x196   : > { %v263_v20 = vpop.permute.xlu0 %262 }
 0x197   : > { %v265_v21 = vmul.f32 %v263_v20, %v259_v17 }
 0x203   : > { %v273_v22 = vpop.permute.xlu1 %272 }
 0x204   : > { %v275_v23 = vadd.f32 %v273_v22, %v265_v21 }
 0x206   : > { %477 = vtanh.f32 %v275_v23  ;;  %355 = vrot.lane.b32.xlu0 %v275_v23, %s532_s9 }
 0x20c   : > { %v478_v24 = vpop.eup %477 }
 0x20d   : > { %278 = vrot.lane.b32.xlu1 %v478_v24, %s530_s7 }
 0x215   : > { %367 = vrot.lane.b32.xlu1 %v275_v23, %s531_s8 }
 0x278   : > { %v356_v27 = vpop.permute.xlu0 %355 }
 0x279   : > { %358 = vst.msk [vmem:[#allocation3] sm:$0x1] %vm352_vm4, %v356_v27 }
 0x27f   : > { %v279_v28 = vpop.permute.xlu1 %278 }
 0x280   : > { %v281_v29 = vmul.f32 %v279_v28, %v259_v17 }
 0x282   : > { %286 = vrot.lane.b32.xlu2 %v281_v29, %s531_s8 }
 0x287   : > { %v368_v48 = vpop.permute.xlu1 %367 }
 0x28a   : > { %362 = vrot.lane.b32.xlu2 %v281_v29, %s530_s7 }
 0x2dc   : > { %v287_v30 = vpop.permute.xlu2 %286 }
 0x2dd   : > { %353 = vst.msk [vmem:[#allocation2] sm:$0x1] %vm352_vm4, %v287_v30  ;;  %440 = vmatmul.msk.f32.vlgmr.msra.gmra.mxu2 %vm204_vm2, %v287_v30 }
 0x2e4   : > { %v363_v47 = vpop.permute.xlu2 %362 }
 0x360   : > { %v310_v35 = vpop.f32.mrf.mxu2 }
 0x361   : > { %v311_v36 = vadd.f32 %v310_v35, %v284_v34 }
 0x363   : > { %479 = vtanh.f32 %v311_v36 }
 0x369   : > { %v480_v37 = vpop.eup %479 }
 0x36a   : > { %442 = vmatmul.msk.f32.vlgmr.msra.gmra.mxu3 %vm318_vm6, %v480_v37 }
 0x3ed   : > { %v343_v40 = vpop.f32.mrf.mxu3 }
 0x3ee   : > { %v344_v41 = vadd.f32 %v343_v40, %v317_v39 }
 0x3f0   : > { %481 = vtanh.f32 %v344_v41 }
 0x3f6   : > { %v482_v43 = vpop.eup %481 }
 0x3f7   : > { %v349_v45 = vmul.f32 %v482_v43, %v347_v42 }
 0x3f9   : > { %v350_v46 = vadd.f32 %v349_v45, %v348_v44 }
 0x3fb   : > { %361 = vst.msk [vmem:[%s571_s27] sm:$0x1] %vm360_vm7, %v350_v46 }
 0x3fc   : > { %366 = vst.msk [vmem:[%s571_s27] sm:$0x1] %vm365_vm8, %v363_v47 }
 0x3fd   : > { %371 = vst.msk [vmem:[%s571_s27] sm:$0x1] %vm370_vm9, %v368_v48 }
 0x3fe PF: > { %s14_s12 = sadd.s32 1, %s523_s12  }
 0x3ff   : > { %p11_p8 = scmp.ge.s32.totalorder %s14_s12, 10  }
 0x401   :  { %13 = sbr.rel (!%p11_p8) target bundleno = 1 (0x1), region = 71 }
 0x406   :  { %389 = vsyncpa [#allocation5], 1 }
 0x407   :  { %391 = vsyncpa [#allocation5 + $0x1], 1 }

</bundles_post_ra>
